<compile_context>
chip_gen: v6e
topology: v6e:2x2x1
jax: 0.10.0
libtpu: 0.0.40
codegen_flags: <defaults>
</compile_context>

<pallas_src>
import math

import jax
import jax.numpy as jnp
from jax.experimental import pallas as pl
from jax.experimental.pallas import tpu as pltpu

_LANES = 128  # vreg lane width — preferred last dim of the flattened view


def _dma_copy_kernel(x_hbm, o_hbm, sem):
    # Whole-array HBM -> HBM DMA.  One descriptor, one wait; the DMA engine
    # does the streaming, so the TensorCore issues ~nothing.
    copy = pltpu.make_async_copy(x_hbm, o_hbm, sem)
    copy.start()
    copy.wait()


def _identity_copy(view: jax.Array) -> jax.Array:
    return pl.pallas_call(
        _dma_copy_kernel,
        out_shape=jax.ShapeDtypeStruct(view.shape, view.dtype),
        in_specs=[pl.BlockSpec(memory_space=pl.ANY)],   # raw HBM ref, no auto-DMA
        out_specs=pl.BlockSpec(memory_space=pl.ANY),
        scratch_shapes=[pltpu.SemaphoreType.DMA(())],
    )(view)


@jax.jit
def _identity_pallas(x: jax.Array) -> jax.Array:
    """Identity pass-through via a single HBM->HBM Pallas DMA copy."""
    total = math.prod(x.shape)
    if total % _LANES == 0:
        # Lane-dense 2-D view — a free bitcast reshape of the contiguous data.
        view = jnp.reshape(x, (total // _LANES, _LANES))
    else:
        # Flat contiguous view; the whole-array DMA needs no padding/slicing.
        view = jnp.reshape(x, (total,))
    out = _identity_copy(view)
    return jnp.reshape(out, x.shape)


def context_save_forward(x: jax.Array, varname: str, context: dict) -> jax.Array:
    """JAX/Pallas equivalent of ContextSave.forward.

    Runs an identity copy through a Pallas kernel and stores the result under
    `varname` in `context` (host-side dict), mirroring the PyTorch module.
    """
    # TODO(synk): PyTorch stores the *same* tensor object (Python aliasing);
    # with immutable JAX arrays, `context[varname] = x; return x` would be the
    # zero-cost equivalent.  We store the (value-identical) kernel output.
    out = _identity_pallas(x)
    context[varname] = out
    return out


if __name__ == "__main__":
    key = jax.random.PRNGKey(0)
    x = jax.random.normal(key, (2, 4, 16, 16), dtype=jnp.float32)

    context = {}
    y = context_save_forward(x, "feat", context)
    y = jax.block_until_ready(y)

    # Semantics check: output == input, and the context holds the same values.
    assert y.shape == x.shape and y.dtype == x.dtype
    assert bool(jnp.all(y == x))
    assert "feat" in context
    assert bool(jnp.all(context["feat"] == x))

    # Also exercise a shape whose element count is NOT a multiple of 128.
    x2 = jax.random.normal(jax.random.PRNGKey(1), (3, 5, 7), dtype=jnp.float32)
    y2 = jax.block_until_ready(context_save_forward(x2, "feat2", context))
    assert y2.shape == x2.shape and bool(jnp.all(y2 == x2))
    assert bool(jnp.all(context["feat2"] == x2))

    print("KERNEL_OK")
</pallas_src>

<mosaic_0001>
module attributes {stable_mosaic.version = 11 : i64} {
  func.func @_dma_copy_kernel(%arg0: memref<16x128xf32, #tpu.memory_space<any>>, %arg1: memref<16x128xf32, #tpu.memory_space<any>>, %arg2: memref<!tpu.dma_semaphore, #tpu.memory_space<semaphore_mem>>) attributes {dimension_semantics = [], scalar_prefetch = 0 : i64, scratch_operands = 1 : i64, tpu.core_type = #tpu.core_type<tc>} {
    tpu.enqueue_dma source(%arg0 : memref<16x128xf32, #tpu.memory_space<any>>) target(%arg1 : memref<16x128xf32, #tpu.memory_space<any>>) target_semaphore(%arg2 : memref<!tpu.dma_semaphore, #tpu.memory_space<semaphore_mem>>)
    tpu.wait_dma2 semaphore(%arg2 : memref<!tpu.dma_semaphore, #tpu.memory_space<semaphore_mem>>) src(%arg0 : memref<16x128xf32, #tpu.memory_space<any>>) dst(%arg1 : memref<16x128xf32, #tpu.memory_space<any>>)
    return
  }
}

</mosaic_0001>

<bundles_post_ra>
// kernel: _identity_pallas.1
= control target key start
LH: loop header
LB: loop body
LE: loop exit
PB: predicated region body
PF: predicated region fallthrough
CT: control target
= control target key end

     0   :  { %s93_s0 = inlined_call_operand.vmem [shape: f32[16,128], index: 0, kind: input, shape index: {}]   ;;  %s94_s1 = inlined_call_operand.vmem [shape: f32[16,128], index: 1, kind: output, shape index: {}]  }
   0x1   :  { %v39_v0 = vld [vmem:[%s93_s0] sm:$0xff]  ;;  %v41_v1 = vld [vmem:[%s93_s0 + $0x8] sm:$0xff] }
   0x2   :  { %40 = vst [vmem:[%s94_s1] sm:$0xff] %v39_v0  ;;  %42 = vst [vmem:[%s94_s1 + $0x8] sm:$0xff] %v41_v1 }
   0x3   :  { %50 = vsyncadd [#allocation2], 256 }
   0x4   :  { %69 = dma.done.wait [#allocation2], 256 }
   0x5   :  { %70 = vsyncadd [#allocation2], 4294967040 }
   0x6   :  { %54 = vsyncmov [#allocation2] }
   0x9   :  { %s55_s14 = vpop.sfrf %54 }
   0xa   :  { %p68_p0 = scmp.ne.s32.totalorder %s55_s14, 0 }
   0xc   :  { %59 = shalt.err (%p68_p0)  }

</bundles_post_ra>
